<compile_context>
chip_gen: v5e
topology: v5e:2x2
jax: 0.10.0
libtpu: 0.0.40
codegen_flags: <defaults>
</compile_context>

<pallas_src>
import functools

import jax
import jax.numpy as jnp
from jax import lax
from jax.experimental import pallas as pl
from jax.experimental.pallas import tpu as pltpu

EPS = 1e-5


# --------------------------------------------------------------------------
# Generation-aware sizing helpers
# --------------------------------------------------------------------------
def _vmem_capacity_bytes():
    """Per-TensorCore physical VMEM (128 MiB v5e/v6e, 64 MiB v7x); safe fallback."""
    try:
        cap = int(getattr(pltpu.get_tpu_info(), "vmem_capacity_bytes", 0))
        if cap > 0:
            return cap
    except Exception:
        pass
    return 64 << 20  # conservative (v7x-sized) default


def _choose_tile_hw(hw, n, c, budget_bytes):
    """Largest multiple-of-128 divisor of hw whose (N, C, tile) f32 block fits budget."""
    if hw % 128 != 0 or hw <= 128:
        return hw  # full-extent block (block == array dim satisfies layout rule)
    best = 128
    for t in range(128, hw + 1, 128):
        if hw % t == 0 and n * c * t * 4 <= budget_bytes:
            best = t
    return best


# --------------------------------------------------------------------------
# Shared head: pooled (N, C) -> packed [logits | score | h | 0-pad] (N, P)
# --------------------------------------------------------------------------
def _heads_from_pooled(pooled, wh, bh, g1, b1, wc, bc, nc, pad):
    # linear_h + BatchNorm1d (training-mode batch stats over N, biased var)
    h_lin = jnp.dot(pooled, wh, preferred_element_type=jnp.float32) + bh
    mean1 = jnp.mean(h_lin, axis=0, keepdims=True)
    var1 = jnp.mean((h_lin - mean1) ** 2, axis=0, keepdims=True)
    h = (h_lin - mean1) * lax.rsqrt(var1 + EPS) * g1 + b1

    # fused classifier + score heads on ReLU(h); sigmoid only on the score col
    rh = jnp.maximum(h, 0.0)
    heads = jnp.dot(rh, wc, preferred_element_type=jnp.float32) + bc
    col = lax.broadcasted_iota(jnp.int32, heads.shape, 1)
    heads = jnp.where(col == nc, jax.nn.sigmoid(heads), heads)

    parts = [heads, h]
    if pad > 0:
        parts.append(jnp.zeros((pooled.shape[0], pad), jnp.float32))
    return jnp.concatenate(parts, axis=1)  # single lane-dense slab


# --------------------------------------------------------------------------
# Path 1: single-block kernel (no grid) -- small x, one HBM pass
# --------------------------------------------------------------------------
def _single_kernel(x_ref, g2_ref, b2_ref, wh_ref, bh_ref, g1_ref, b1_ref,
                   wc_ref, bc_ref, out_ref, *, nc, pad, inv_count, inv_hw):
    x = x_ref[...]                                                   # (N, C, HW)
    s = jnp.sum(jnp.sum(x, axis=2, keepdims=True), axis=0)          # (C, 1)
    ss = jnp.sum(jnp.sum(x * x, axis=2, keepdims=True), axis=0)     # (C, 1)
    mean2 = s * inv_count
    var2 = jnp.maximum(ss * inv_count - mean2 * mean2, 0.0)         # NaN guard
    scale2 = g2_ref[...] * lax.rsqrt(var2 + EPS)
    shift2 = b2_ref[...] - mean2 * scale2

    y = jnp.maximum(x * scale2 + shift2, 0.0)
    pooled = jnp.sum(y, axis=2) * inv_hw                             # (N, C)

    out_ref[...] = _heads_from_pooled(pooled, wh_ref[...], bh_ref[...],
                                      g1_ref[...], b1_ref[...],
                                      wc_ref[...], bc_ref[...], nc, pad)


# --------------------------------------------------------------------------
# Path 2/3: two-phase streaming kernel (optionally VMEM-cached x)
#   grid = (phase, hw_tile); phase 0 = stats (+ cache fill), phase 1 = BN+ReLU+pool
# --------------------------------------------------------------------------
def _stream_kernel(x_ref, g2_ref, b2_ref, wh_ref, bh_ref, g1_ref, b1_ref,
                   wc_ref, bc_ref, out_ref,
                   stat0_ref, stat1_ref, pooled_ref, *rest,
                   nc, pad, inv_count, inv_hw, tile_hw, cache_x):
    x_cache_ref = rest[0] if cache_x else None

    phase = pl.program_id(0)
    t = pl.program_id(1)
    last_t = pl.num_programs(1) - 1

    # ---------------- phase 0: per-channel sum / sum-of-squares --------------
    @pl.when((phase == 0) & (t == 0))
    def _():
        stat0_ref[...] = jnp.zeros_like(stat0_ref)
        stat1_ref[...] = jnp.zeros_like(stat1_ref)
        pooled_ref[...] = jnp.zeros_like(pooled_ref)

    @pl.when(phase == 0)
    def _():
        xt = x_ref[...]                                              # (N, C, T)
        stat0_ref[...] += jnp.sum(jnp.sum(xt, axis=2, keepdims=True), axis=0)
        stat1_ref[...] += jnp.sum(jnp.sum(xt * xt, axis=2, keepdims=True), axis=0)
        if cache_x:
            off = pl.multiple_of(t * tile_hw, tile_hw)
            x_cache_ref[:, :, pl.ds(off, tile_hw)] = xt              # fill VMEM cache

    # ---------------- phase 1: normalize + ReLU + pool, then heads -----------
    @pl.when(phase == 1)
    def _():
        @pl.when(t == 0)
        def _():
            # Hoisted BN2d affine params (computed once); the stat scratch is
            # reused to hold (scale, shift) for the remaining tiles.
            mean2 = stat0_ref[...] * inv_count
            var2 = jnp.maximum(stat1_ref[...] * inv_count - mean2 * mean2, 0.0)
            scale2 = g2_ref[...] * lax.rsqrt(var2 + EPS)
            shift2 = b2_ref[...] - mean2 * scale2
            stat0_ref[...] = scale2
            stat1_ref[...] = shift2

        if cache_x:
            off = pl.multiple_of(t * tile_hw, tile_hw)
            xt = x_cache_ref[:, :, pl.ds(off, tile_hw)]              # no HBM re-read
        else:
            xt = x_ref[...]                                          # reverse-order stream
        y = jnp.maximum(xt * stat0_ref[...] + stat1_ref[...], 0.0)
        pooled_ref[...] += jnp.sum(y, axis=2)                        # (N, C)

        @pl.when(t == last_t)
        def _():
            pooled = pooled_ref[...] * inv_hw
            out_ref[...] = _heads_from_pooled(pooled, wh_ref[...], bh_ref[...],
                                              g1_ref[...], b1_ref[...],
                                              wc_ref[...], bc_ref[...], nc, pad)


# --------------------------------------------------------------------------
# Wrapper
# --------------------------------------------------------------------------
def classifier_module_first(x_nchw, params, *, mode=None, tile_hw=None):
    """x_nchw: (N, C, H, W) float32. Returns (out, h, score) as in the module."""
    N, C, H, W = x_nchw.shape
    assert H == W, "avg_pool2d(x, x.size(-1)) fully reduces only when H == W"
    HW = H * W
    x = x_nchw.reshape(N, C, HW).astype(jnp.float32)  # free view of contiguous NCHW

    hidden = params["wh"].shape[0]     # Linear_h weight: (hidden, C)
    nc = params["w"].shape[0]          # Linear weight:   (num_classes, hidden)

    # Packed, lane-dense output slab: [logits | score | h | zero pad] -> 128k lanes.
    P = ((nc + 1 + hidden + 127) // 128) * 128
    pad = P - (nc + 1) - hidden

    # Fused head weights: (hidden, nc + 1) = [W_cls^T | W_score^T].
    w_comb = jnp.concatenate([params["w"].T, params["ws"].T], axis=1).astype(jnp.float32)
    b_comb = jnp.concatenate([params["b"], params["bs"]]).reshape(1, nc + 1).astype(jnp.float32)

    param_args = (
        params["bn2_gamma"].reshape(C, 1).astype(jnp.float32),
        params["bn2_beta"].reshape(C, 1).astype(jnp.float32),
        params["wh"].T.astype(jnp.float32),                 # (C, hidden)
        params["bh"].reshape(1, hidden).astype(jnp.float32),
        params["bn1_gamma"].reshape(1, hidden).astype(jnp.float32),
        params["bn1_beta"].reshape(1, hidden).astype(jnp.float32),
        w_comb,                                             # (hidden, nc + 1)
        b_comb,                                             # (1, nc + 1)
    )

    inv_count = 1.0 / float(N * HW)   # BN2d: biased stats over (N, H, W)
    inv_hw = 1.0 / float(HW)          # global average pool
    statics = dict(nc=nc, pad=pad, inv_count=inv_count, inv_hw=inv_hw)

    x_bytes = N * C * HW * 4
    param_bytes = sum(int(a.size) * 4 for a in param_args)
    out_bytes = N * P * 4
    flops = int(8 * N * C * HW + 2 * N * hidden * (C + nc + 1) + 8 * N * hidden)
    transcendentals = int(C + hidden + N * (nc + 1))

    vmem_cap = _vmem_capacity_bytes()
    vmem_ceiling = int(0.75 * vmem_cap)                      # ~96 MiB v5e/v6e, ~48 MiB v7x
    tile_budget = max(2 << 20, min(16 << 20, vmem_cap // 12))  # ~10.7 MiB / ~5.3 MiB

    # ---------------- path selection ----------------
    if mode is None:
        if x_bytes <= (4 << 20):
            mode = "single"          # small problem: kill grid + second pass overhead
        else:
            tile_guess = _choose_tile_hw(HW, N, C, tile_budget)
            if x_bytes + 2 * N * C * tile_guess * 4 + (8 << 20) <= vmem_ceiling:
                mode = "cached"      # single HBM pass, stats overlapped with DMA
            else:
                mode = "stream"      # two HBM passes (minus the boundary tile)

    if mode == "single":
        vmem_limit = int(min(max(x_bytes + param_bytes + out_bytes + (8 << 20), 16 << 20),
                             vmem_ceiling))
        packed = pl.pallas_call(
            functools.partial(_single_kernel, **statics),
            out_shape=jax.ShapeDtypeStruct((N, P), jnp.float32),
            compiler_params=pltpu.CompilerParams(vmem_limit_bytes=vmem_limit),
            cost_estimate=pl.CostEstimate(
                flops=flops, transcendentals=transcendentals,
                bytes_accessed=int(x_bytes + param_bytes + out_bytes)),
        )(x, *param_args)
    else:
        cache_x = (mode == "cached")
        if tile_hw is None:
            tile_hw = _choose_tile_hw(HW, N, C, tile_budget)
        assert HW % tile_hw == 0
        assert tile_hw == HW or tile_hw % 128 == 0
        num_tiles = HW // tile_hw
        tile_bytes = N * C * tile_hw * 4

        # x index map: phase 0 walks forward. Phase 1 is pinned to the final
        # block in cached mode (-> zero extra HBM traffic; the body reads the
        # VMEM cache) or walks in reverse in stream mode (-> the boundary tile
        # is reused without a re-DMA).
        if cache_x:
            x_index = lambda p, t: (0, 0, jnp.where(p == 0, t, num_tiles - 1))
        else:
            x_index = lambda p, t: (0, 0, jnp.where(p == 0, t, num_tiles - 1 - t))

        x_spec = pl.BlockSpec((N, C, tile_hw), x_index)
        n_buf = 2
        if (not cache_x) and num_tiles >= 4 and tile_bytes <= (1 << 20) \
                and hasattr(pl, "Buffered"):
            # Tiny tiles: a third buffer recovers exposed DMA latency.
            try:
                x_spec = pl.BlockSpec((N, C, tile_hw), x_index,
                                      pipeline_mode=pl.Buffered(3))
                n_buf = 3
            except Exception:
                pass
        in_specs = [x_spec]
        in_specs += [pl.BlockSpec(a.shape, lambda p, t: (0, 0)) for a in param_args]

        scratch_shapes = [
            pltpu.VMEM((C, 1), jnp.float32),   # sum   -> BN2d scale (phase 1)
            pltpu.VMEM((C, 1), jnp.float32),   # sumsq -> BN2d shift (phase 1)
            pltpu.VMEM((N, C), jnp.float32),   # pooled accumulator
        ]
        if cache_x:
            scratch_shapes.append(pltpu.VMEM((N, C, HW), jnp.float32))  # x cache

        scratch_bytes = 2 * C * 4 + N * C * 4 + (x_bytes if cache_x else 0)
        vmem_need = (n_buf * tile_bytes + 2 * (param_bytes + out_bytes)
                     + scratch_bytes + (8 << 20))
        vmem_limit = int(min(max(vmem_need, 16 << 20), vmem_ceiling))

        hbm_x_bytes = x_bytes if cache_x else max(2 * x_bytes - tile_bytes, x_bytes)

        packed = pl.pallas_call(
            functools.partial(_stream_kernel, tile_hw=tile_hw, cache_x=cache_x,
                              **statics),
            out_shape=jax.ShapeDtypeStruct((N, P), jnp.float32),
            grid_spec=pltpu.PrefetchScalarGridSpec(
                num_scalar_prefetch=0,
                grid=(2, num_tiles),             # (phase, hw tile)
                in_specs=in_specs,
                out_specs=pl.BlockSpec((N, P), lambda p, t: (0, 0)),
                scratch_shapes=scratch_shapes,
            ),
            # Accumulators require sequential grid execution -> both axes
            # "arbitrary" (see TODO(synk) about v7x dual-core sharding).
            compiler_params=pltpu.CompilerParams(
                dimension_semantics=("arbitrary", "arbitrary"),
                vmem_limit_bytes=vmem_limit),
            cost_estimate=pl.CostEstimate(
                flops=flops, transcendentals=transcendentals,
                bytes_accessed=int(hbm_x_bytes + param_bytes + out_bytes)),
        )(x, *param_args)

    out = packed[:, :nc]
    score = packed[:, nc:nc + 1]
    h = packed[:, nc + 1:nc + 1 + hidden]
    return out, h, score


# --------------------------------------------------------------------------
# Pure-JAX reference and parameter construction
# --------------------------------------------------------------------------
def _reference(x_nchw, params):
    """Pure-JAX reference mirroring the PyTorch forward (training-mode BN)."""
    N, C, H, W = x_nchw.shape
    x = x_nchw.astype(jnp.float32)
    mean2 = jnp.mean(x, axis=(0, 2, 3), keepdims=True)
    var2 = jnp.mean((x - mean2) ** 2, axis=(0, 2, 3), keepdims=True)
    g2 = params["bn2_gamma"].reshape(1, C, 1, 1)
    b2 = params["bn2_beta"].reshape(1, C, 1, 1)
    y = jnp.maximum((x - mean2) / jnp.sqrt(var2 + EPS) * g2 + b2, 0.0)
    pooled = jnp.mean(y, axis=(2, 3))                     # (N, C)
    h_lin = pooled @ params["wh"].T + params["bh"]
    mean1 = jnp.mean(h_lin, axis=0, keepdims=True)
    var1 = jnp.mean((h_lin - mean1) ** 2, axis=0, keepdims=True)
    h = (h_lin - mean1) / jnp.sqrt(var1 + EPS) * params["bn1_gamma"] + params["bn1_beta"]
    rh = jnp.maximum(h, 0.0)
    out = rh @ params["w"].T + params["b"]
    score = jax.nn.sigmoid(rh @ params["ws"].T + params["bs"])
    return out, h, score


def make_params(key, in_channel_block, hidden_channel, num_classes):
    ks = jax.random.split(key, 10)
    scale = 0.1
    return {
        "bn2_gamma": 1.0 + scale * jax.random.normal(ks[0], (in_channel_block,), jnp.float32),
        "bn2_beta": scale * jax.random.normal(ks[1], (in_channel_block,), jnp.float32),
        "wh": scale * jax.random.normal(ks[2], (hidden_channel, in_channel_block), jnp.float32),
        "bh": scale * jax.random.normal(ks[3], (hidden_channel,), jnp.float32),
        "bn1_gamma": 1.0 + scale * jax.random.normal(ks[4], (hidden_channel,), jnp.float32),
        "bn1_beta": scale * jax.random.normal(ks[5], (hidden_channel,), jnp.float32),
        "w": scale * jax.random.normal(ks[6], (num_classes, hidden_channel), jnp.float32),
        "b": scale * jax.random.normal(ks[7], (num_classes,), jnp.float32),
        "ws": scale * jax.random.normal(ks[8], (1, hidden_channel), jnp.float32),
        "bs": scale * jax.random.normal(ks[9], (1,), jnp.float32),
    }


def _check(got, ref, n, nc, hidden):
    out, h, score = got
    assert out.shape == (n, nc)
    assert h.shape == (n, hidden)
    assert score.shape == (n, 1)
    assert jnp.allclose(out, ref[0], atol=1e-4, rtol=1e-4)
    assert jnp.allclose(h, ref[1], atol=1e-4, rtol=1e-4)
    assert jnp.allclose(score, ref[2], atol=1e-4, rtol=1e-4)


if __name__ == "__main__":
    key = jax.random.PRNGKey(0)
    k1, k2, k3, k4 = jax.random.split(key, 4)

    hidden_channel, num_classes = 32, 10

    # Case 1: small module-consistent shapes; exercise every path explicitly.
    N, C, H, W = 2, 8, 16, 16
    x = jax.random.normal(k1, (N, C, H, W), jnp.float32)
    params = make_params(k2, C, hidden_channel, num_classes)
    ref = _reference(x, params)
    for mode, tile in (("single", None), ("cached", 128), ("stream", 128), (None, None)):
        got = jax.block_until_ready(
            classifier_module_first(x, params, mode=mode, tile_hw=tile))
        _check(got, ref, N, num_classes, hidden_channel)

    # Case 2: larger spatial extent -> multi-tile pipeline (8 hw tiles),
    # reverse-order second pass and deeper buffering on the stream path.
    N2, C2, H2, W2 = 4, 16, 32, 32
    x2 = jax.random.normal(k3, (N2, C2, H2, W2), jnp.float32)
    params2 = make_params(k4, C2, hidden_channel, num_classes)
    ref2 = _reference(x2, params2)
    for mode, tile in (("stream", 128), ("cached", 256), (None, None)):
        got = jax.block_until_ready(
            classifier_module_first(x2, params2, mode=mode, tile_hw=tile))
        _check(got, ref2, N2, num_classes, hidden_channel)

    print("KERNEL_OK")
</pallas_src>

<mosaic_0001>
module attributes {stable_mosaic.version = 11 : i64} {
  func.func @_single_kernel(%arg0: memref<2x8x256xf32, #tpu.memory_space<vmem>>, %arg1: memref<8x1xf32, #tpu.memory_space<vmem>>, %arg2: memref<8x1xf32, #tpu.memory_space<vmem>>, %arg3: memref<8x32xf32, #tpu.memory_space<vmem>>, %arg4: memref<1x32xf32, #tpu.memory_space<vmem>>, %arg5: memref<1x32xf32, #tpu.memory_space<vmem>>, %arg6: memref<1x32xf32, #tpu.memory_space<vmem>>, %arg7: memref<32x11xf32, #tpu.memory_space<vmem>>, %arg8: memref<1x11xf32, #tpu.memory_space<vmem>>, %arg9: memref<2x128xf32, #tpu.memory_space<vmem>>) attributes {dimension_semantics = [], scalar_prefetch = 0 : i64, scratch_operands = 0 : i64, tpu.core_type = #tpu.core_type<tc>} {
    %c0 = arith.constant 0 : index
    %c0_0 = arith.constant 0 : index
    %c0_1 = arith.constant 0 : index
    %0 = vector.load %arg0[%c0, %c0_0, %c0_1] : memref<2x8x256xf32, #tpu.memory_space<vmem>>, vector<2x8x256xf32>
    %cst = arith.constant dense<0.000000e+00> : vector<2x8xf32>
    %1 = vector.multi_reduction <add>, %0, %cst [2] : vector<2x8x256xf32> to vector<2x8xf32>
    %2 = vector.shape_cast %1 : vector<2x8xf32> to vector<2x8x1xf32>
    %cst_2 = arith.constant dense<0.000000e+00> : vector<8x1xf32>
    %3 = vector.multi_reduction <add>, %2, %cst_2 [0] : vector<2x8x1xf32> to vector<8x1xf32>
    %4 = arith.mulf %0, %0 : vector<2x8x256xf32>
    %cst_3 = arith.constant dense<0.000000e+00> : vector<2x8xf32>
    %5 = vector.multi_reduction <add>, %4, %cst_3 [2] : vector<2x8x256xf32> to vector<2x8xf32>
    %6 = vector.shape_cast %5 : vector<2x8xf32> to vector<2x8x1xf32>
    %cst_4 = arith.constant dense<0.000000e+00> : vector<8x1xf32>
    %7 = vector.multi_reduction <add>, %6, %cst_4 [0] : vector<2x8x1xf32> to vector<8x1xf32>
    %cst_5 = arith.constant 0.001953125 : f32
    %8 = vector.broadcast %cst_5 : f32 to vector<8x1xf32>
    %9 = arith.mulf %3, %8 : vector<8x1xf32>
    %cst_6 = arith.constant 0.001953125 : f32
    %10 = vector.broadcast %cst_6 : f32 to vector<8x1xf32>
    %11 = arith.mulf %7, %10 : vector<8x1xf32>
    %12 = arith.mulf %9, %9 : vector<8x1xf32>
    %13 = arith.subf %11, %12 : vector<8x1xf32>
    %cst_7 = arith.constant 0.000000e+00 : f32
    %14 = vector.broadcast %cst_7 : f32 to vector<8x1xf32>
    %15 = arith.maximumf %13, %14 : vector<8x1xf32>
    %c0_8 = arith.constant 0 : index
    %c0_9 = arith.constant 0 : index
    %16 = vector.load %arg1[%c0_8, %c0_9] : memref<8x1xf32, #tpu.memory_space<vmem>>, vector<8x1xf32>
    %cst_10 = arith.constant 9.99999974E-6 : f32
    %17 = vector.broadcast %cst_10 : f32 to vector<8x1xf32>
    %18 = arith.addf %15, %17 : vector<8x1xf32>
    %19 = math.rsqrt %18 : vector<8x1xf32>
    %20 = arith.mulf %16, %19 : vector<8x1xf32>
    %c0_11 = arith.constant 0 : index
    %c0_12 = arith.constant 0 : index
    %21 = vector.load %arg2[%c0_11, %c0_12] : memref<8x1xf32, #tpu.memory_space<vmem>>, vector<8x1xf32>
    %22 = arith.mulf %9, %20 : vector<8x1xf32>
    %23 = arith.subf %21, %22 : vector<8x1xf32>
    %24 = vector.shape_cast %20 : vector<8x1xf32> to vector<1x8x1xf32>
    %25 = vector.broadcast %24 : vector<1x8x1xf32> to vector<2x8x256xf32>
    %26 = arith.mulf %0, %25 : vector<2x8x256xf32>
    %27 = vector.shape_cast %23 : vector<8x1xf32> to vector<1x8x1xf32>
    %28 = vector.broadcast %27 : vector<1x8x1xf32> to vector<2x8x256xf32>
    %29 = arith.addf %26, %28 : vector<2x8x256xf32>
    %cst_13 = arith.constant 0.000000e+00 : f32
    %30 = vector.broadcast %cst_13 : f32 to vector<2x8x256xf32>
    %31 = arith.maximumf %29, %30 : vector<2x8x256xf32>
    %cst_14 = arith.constant dense<0.000000e+00> : vector<2x8xf32>
    %32 = vector.multi_reduction <add>, %31, %cst_14 [2] : vector<2x8x256xf32> to vector<2x8xf32>
    %cst_15 = arith.constant 3.906250e-03 : f32
    %33 = vector.broadcast %cst_15 : f32 to vector<2x8xf32>
    %34 = arith.mulf %32, %33 : vector<2x8xf32>
    %c0_16 = arith.constant 0 : index
    %c0_17 = arith.constant 0 : index
    %35 = vector.load %arg3[%c0_16, %c0_17] : memref<8x32xf32, #tpu.memory_space<vmem>>, vector<8x32xf32>
    %c0_18 = arith.constant 0 : index
    %c0_19 = arith.constant 0 : index
    %36 = vector.load %arg4[%c0_18, %c0_19] : memref<1x32xf32, #tpu.memory_space<vmem>>, vector<1x32xf32>
    %c0_20 = arith.constant 0 : index
    %c0_21 = arith.constant 0 : index
    %37 = vector.load %arg5[%c0_20, %c0_21] : memref<1x32xf32, #tpu.memory_space<vmem>>, vector<1x32xf32>
    %c0_22 = arith.constant 0 : index
    %c0_23 = arith.constant 0 : index
    %38 = vector.load %arg6[%c0_22, %c0_23] : memref<1x32xf32, #tpu.memory_space<vmem>>, vector<1x32xf32>
    %c0_24 = arith.constant 0 : index
    %c0_25 = arith.constant 0 : index
    %39 = vector.load %arg7[%c0_24, %c0_25] : memref<32x11xf32, #tpu.memory_space<vmem>>, vector<32x11xf32>
    %c0_26 = arith.constant 0 : index
    %c0_27 = arith.constant 0 : index
    %40 = vector.load %arg8[%c0_26, %c0_27] : memref<1x11xf32, #tpu.memory_space<vmem>>, vector<1x11xf32>
    %cst_28 = arith.constant dense<0.000000e+00> : vector<2x32xf32>
    %41 = tpu.matmul %34, %35, %cst_28 {dimension_numbers = #tpu.dot_dimension_numbers<[1], [0], [0], [1], [0, 0, 1, 1], [], []>} : vector<2x8xf32>, vector<8x32xf32>, vector<2x32xf32> -> vector<2x32xf32>
    %42 = vector.broadcast %36 : vector<1x32xf32> to vector<2x32xf32>
    %43 = arith.addf %41, %42 : vector<2x32xf32>
    %cst_29 = arith.constant dense<0.000000e+00> : vector<32xf32>
    %44 = vector.multi_reduction <add>, %43, %cst_29 [0] : vector<2x32xf32> to vector<32xf32>
    %45 = vector.shape_cast %44 : vector<32xf32> to vector<1x32xf32>
    %cst_30 = arith.constant 2.000000e+00 : f32
    %46 = vector.broadcast %cst_30 : f32 to vector<1x32xf32>
    %47 = arith.divf %45, %46 : vector<1x32xf32>
    %48 = vector.broadcast %47 : vector<1x32xf32> to vector<2x32xf32>
    %49 = arith.subf %43, %48 : vector<2x32xf32>
    %50 = arith.mulf %49, %49 : vector<2x32xf32>
    %cst_31 = arith.constant dense<0.000000e+00> : vector<32xf32>
    %51 = vector.multi_reduction <add>, %50, %cst_31 [0] : vector<2x32xf32> to vector<32xf32>
    %52 = vector.shape_cast %51 : vector<32xf32> to vector<1x32xf32>
    %cst_32 = arith.constant 2.000000e+00 : f32
    %53 = vector.broadcast %cst_32 : f32 to vector<1x32xf32>
    %54 = arith.divf %52, %53 : vector<1x32xf32>
    %55 = vector.broadcast %47 : vector<1x32xf32> to vector<2x32xf32>
    %56 = arith.subf %43, %55 : vector<2x32xf32>
    %cst_33 = arith.constant 9.99999974E-6 : f32
    %57 = vector.broadcast %cst_33 : f32 to vector<1x32xf32>
    %58 = arith.addf %54, %57 : vector<1x32xf32>
    %59 = math.rsqrt %58 : vector<1x32xf32>
    %60 = vector.broadcast %59 : vector<1x32xf32> to vector<2x32xf32>
    %61 = arith.mulf %56, %60 : vector<2x32xf32>
    %62 = vector.broadcast %37 : vector<1x32xf32> to vector<2x32xf32>
    %63 = arith.mulf %61, %62 : vector<2x32xf32>
    %64 = vector.broadcast %38 : vector<1x32xf32> to vector<2x32xf32>
    %65 = arith.addf %63, %64 : vector<2x32xf32>
    %cst_34 = arith.constant 0.000000e+00 : f32
    %66 = vector.broadcast %cst_34 : f32 to vector<2x32xf32>
    %67 = arith.maximumf %65, %66 : vector<2x32xf32>
    %cst_35 = arith.constant dense<0.000000e+00> : vector<2x11xf32>
    %68 = tpu.matmul %67, %39, %cst_35 {dimension_numbers = #tpu.dot_dimension_numbers<[1], [0], [0], [1], [0, 0, 1, 1], [], []>} : vector<2x32xf32>, vector<32x11xf32>, vector<2x11xf32> -> vector<2x11xf32>
    %69 = vector.broadcast %40 : vector<1x11xf32> to vector<2x11xf32>
    %70 = arith.addf %68, %69 : vector<2x11xf32>
    %71 = tpu.iota {dimensions = array<i32: 1>} : vector<2x11xi32>
    %c10_i32 = arith.constant 10 : i32
    %72 = vector.broadcast %c10_i32 : i32 to vector<2x11xi32>
    %73 = arith.cmpi eq, %71, %72 : vector<2x11xi32>
    %74 = arith.negf %70 : vector<2x11xf32>
    %75 = math.exp %74 : vector<2x11xf32>
    %cst_36 = arith.constant 1.000000e+00 : f32
    %76 = vector.broadcast %cst_36 : f32 to vector<2x11xf32>
    %77 = arith.addf %76, %75 : vector<2x11xf32>
    %78 = arith.divf %76, %77 : vector<2x11xf32>
    %79 = arith.select %73, %78, %70 : vector<2x11xi1>, vector<2x11xf32>
    %cst_37 = arith.constant 0.000000e+00 : f32
    %80 = vector.broadcast %cst_37 : f32 to vector<2x85xf32>
    %81 = tpu.concatenate %79, %65, %80 in 1 : vector<2x11xf32>, vector<2x32xf32>, vector<2x85xf32> -> vector<2x128xf32>
    %c0_38 = arith.constant 0 : index
    %c0_39 = arith.constant 0 : index
    %82 = vector.load %arg9[%c0_38, %c0_39] : memref<2x128xf32, #tpu.memory_space<vmem>>, vector<2x128xf32>
    tpu.vector_store %arg9[%c0_38, %c0_39], %81 {strides = array<i32>} : memref<2x128xf32, #tpu.memory_space<vmem>>, vector<2x128xf32>,
    return
  }
}

</mosaic_0001>

<bundles_post_ra>
// kernel: tpu_custom_call.1
= control target key start
LH: loop header
LB: loop body
LE: loop exit
PB: predicated region body
PF: predicated region fallthrough
CT: control target
= control target key end

     0   :  { %s427_s0 = inlined_call_operand.vmem [shape: f32[2,8,256], index: 0, kind: input, shape index: {}]   ;;  %s428_s1 = inlined_call_operand.vmem [shape: f32[8,1], index: 1, kind: input, shape index: {}]   ;;  %s429_s2 = inlined_call_operand.vmem [shape: f32[8,1], index: 2, kind: input, shape index: {}]   ;;  %s430_s3 = inlined_call_operand.vmem [shape: f32[8,32], index: 3, kind: input, shape index: {}]   ;;  %s431_s4 = inlined_call_operand.vmem [shape: f32[1,32], index: 4, kind: input, shape index: {}]   ;;  %s432_s5 = inlined_call_operand.vmem [shape: f32[1,32], index: 5, kind: input, shape index: {}]   ;;  %s433_s6 = inlined_call_operand.vmem [shape: f32[1,32], index: 6, kind: input, shape index: {}]   ;;  %s434_s7 = inlined_call_operand.vmem [shape: f32[32,11], index: 7, kind: input, shape index: {}]   ;;  %s435_s8 = inlined_call_operand.vmem [shape: f32[1,11], index: 8, kind: input, shape index: {}]   ;;  %s436_s9 = inlined_call_operand.hbm [shape: f32[2,128], index: 9, kind: output, shape index: {}]  }
   0x1   :  { %v33_v0 = vld [vmem:[%s427_s0] sm:$0xff]  ;;  %v34_v1 = vld [vmem:[%s427_s0 + $0x8] sm:$0xff]  ;;  %v35_v2 = vld [vmem:[%s427_s0 + $0x10] sm:$0xff] }
   0x2   :  { %v37_v3 = vadd.f32 %v34_v1, %v33_v0  ;;  %v44_v4 = vmul.f32 %v33_v0, %v33_v0  ;;  %v45_v5 = vmul.f32 %v34_v1, %v34_v1  ;;  %v36_v6 = vld [vmem:[%s427_s0 + $0x18] sm:$0xff] }
   0x3   :  { %14 = vsyncpa [#allocation3], 0  ;;  %v46_v8 = vmul.f32 %v35_v2, %v35_v2  ;;  %v47_v9 = vmul.f32 %v36_v6, %v36_v6  ;;  %v40_v10 = vadd.f32 %v36_v6, %v35_v2  ;;  %v318_v12 = vmov 0   ;;  %v60_v30 = vld [vmem:[%s428_s1] sm:$0xff]  ;;  %s320_s10 = smov 11   ;;  %s260_s14 = sshll.u32 %s436_s9, 4  ;;  %s261_s14 = int_to_ptr.hbm [resolvable:$true] %s260_s14 }
   0x4   :  { %38 = vadd.xlane.f32.xlu0 %v37_v3  ;;  %v48_v7 = vadd.f32 %v45_v5, %v44_v4  ;;  %276 = vset.pattern.permute.xlu2 %v318_v12  ;;  %v73_v35 = vld [vmem:[%s429_s2] sm:$0xff]  ;;  %v120_v54 = vlaneseq  ;;  %vm124_vm3 = vcmask 1041409   ;;  %vm126_vm4 = vcmask 64512  }
   0x5   :  { %v51_v11 = vadd.f32 %v47_v9, %v46_v8  ;;  %277 = vset.pattern.permute.xlu0 %v318_v12  ;;  %v106_v53 = vld [vmem:[%s430_s3] sm:$0xff]  ;;  %v319_v63 = vmov 2.0   ;;  %vm149_vm5 = vcmask 254976   ;;  %vm199_vm10 = vcmask 261120  }
   0x6   :  { %49 = vadd.xlane.f32.xlu1 %v48_v7  ;;  %144 = vmatpush.msra.mxu0 %v106_v53  ;;  %v393_v55 = vand.u32 127, %v120_v54 }
   0x8   :  { %vm223_vm13 = vcmp.eq.s32.totalorder %v393_v55, 10 }
   0xc   :  { %41 = vadd.xlane.f32.xlu0 %v40_v10 }
   0xe   :  { %52 = vadd.xlane.f32.xlu1 %v51_v11 }
  0x77   :  { %v39_v13 = vpop.xlane.xlu0 %38 }
  0x79   :  { %v50_v14 = vpop.xlane.xlu1 %49 }
  0x7f   :  { %v42_v15 = vpop.xlane.xlu0 %41 }
  0x80   :  { %v43_v16 = vadd.f32 %v42_v15, %v39_v13 }
  0x81   :  { %v53_v17 = vpop.xlane.xlu1 %52 }
  0x82   :  { %v55_v18 = vmul.f32 0.001953125, %v43_v16  ;;  %v54_v19 = vadd.f32 %v53_v17, %v50_v14 }
  0x84   :  { %v57_v20 = vmul.f32 %v55_v18, %v55_v18  ;;  %v56_v21 = vmul.f32 0.001953125, %v54_v19 }
  0x86   :  { %v58_v22 = vsub.f32 %v56_v21, %v57_v20 }
  0x88   :  { %v59_v23 = vmax.f32 %v58_v22, 0.0  ;;  %v113_v22 = vld [vmem:[%s434_s7 + $0x18] sm:$0xff] }
  0x89   :  { %215 = vmatpush.msra.mxu1 %v113_v22 }
  0x8a   :  { %v61_v24 = vadd.f32 1e-05, %v59_v23  ;;  %v112_v23 = vld [vmem:[%s434_s7 + $0x10] sm:$0xff] }
  0x8b   :  { %216 = vmatpush.msra.mxu1 %v112_v23 }
  0x8c   :  { %282 = vrsqrt.f32 %v61_v24  ;;  %vm68_vm1 = vweird.f32 %v61_v24 }
  0x8d   :  { %284 = vrcp.f32 %v319_v63 }
  0x92   :  { %v283_v25 = vpop.eup %282 }
  0x93   :  { %v63_v26 = vmul.f32 %v283_v25, %v61_v24  ;;  %vm69_vm0 = vweird.f32 %v283_v25 }
  0x94   :  { %vm70_vm2 = vmor %vm68_vm1, %vm69_vm0  ;;  %vm248_vm0 = vcmask 89088   ;;  %vm250_vm1 = vcmask 351232  }
  0x95   :  { %v64_v27 = vmul.f32 %v283_v25, %v63_v26 }
  0x97   :  { %v65_v28 = vmul.f32 0.5, %v64_v27 }
  0x99   :  { %v66_v29 = vsub.f32 1.5, %v65_v28  ;;  %v110_v28 = vld [vmem:[%s434_s7] sm:$0xff] }
  0x9b   :  { %v67_v31 = vmul.f32 %v283_v25, %v66_v29 }
  0x9d   :  { %v71_v32 = vsel %vm70_vm2, %v283_v25, %v67_v31  ;;  %v111_v25 = vld [vmem:[%s434_s7 + $0x8] sm:$0xff] }
  0x9e   :  { %v72_v33 = vmul.f32 %v71_v32, %v60_v30  ;;  %217 = vmatpush.msra.mxu1 %v111_v25 }
  0xa0   :  { %78 = vperm.xlu2 %276, %v72_v33   ;;  %v74_v34 = vmul.f32 %v72_v33, %v55_v18  ;;  %218 = vmatpush.msra.mxu1 %v110_v28 }
  0xa2   :  { %v75_v36 = vsub.f32 %v73_v35, %v74_v34 }
  0xa8   :  { %87 = vperm.xlu2 %276, %v75_v36  }
  0xfa   :  { %v79_v37 = vpop.permute.xlu2 %78 }
  0xfb   :  { %v81_v38 = vmul.f32 %v79_v37, %v33_v0  ;;  %v82_v39 = vmul.f32 %v79_v37, %v34_v1  ;;  %v83_v40 = vmul.f32 %v79_v37, %v35_v2  ;;  %v84_v41 = vmul.f32 %v79_v37, %v36_v6  ;;  %v285_v0 = vpop.eup %284  ;;  %v278_v1 = vld [vmem:[%s431_s4] ss:$0 sm:$0xff] }
  0xfc   :  { %v158_v2 = vmul.f32 2.0, %v285_v0  ;;  %vm162_vm6 = vweird.f32 %v285_v0 }
  0xfe   :  { %v159_v5 = vsub.f32 1.0, %v158_v2 }
 0x100   :  { %v160_v8 = vmul.f32 %v285_v0, %v159_v5 }
 0x102   :  { %v88_v42 = vpop.permute.xlu2 %87  ;;  %v161_v11 = vadd.f32 %v285_v0, %v160_v8 }
 0x103   :  { %v92_v43 = vadd.f32 %v88_v42, %v83_v40  ;;  %v93_v44 = vadd.f32 %v88_v42, %v84_v41  ;;  %v90_v45 = vadd.f32 %v88_v42, %v81_v38  ;;  %v91_v46 = vadd.f32 %v88_v42, %v82_v39  ;;  %v279_v38 = vld [vmem:[%s432_s5] ss:$0 sm:$0xff]  ;;  %s321_s5 = smov [#allocation2]  }
 0x104   :  { %v163_v14 = vsel %vm162_vm6, %v285_v0, %v161_v11  ;;  %v280_v41 = vld [vmem:[%s433_s6] ss:$0 sm:$0xff]  ;;  %s258_s6 = sshll.u32 %s321_s5, 4  ;;  %s259_s6 = int_to_ptr.vmem [resolvable:$true] %s258_s6 }
 0x105   :  { %v96_v47 = vmax.f32 %v92_v43, 0.0  ;;  %v97_v48 = vmax.f32 %v93_v44, 0.0  ;;  %v94_v49 = vmax.f32 %v90_v45, 0.0  ;;  %v95_v50 = vmax.f32 %v91_v46, 0.0  ;;  %v281_v45 = vld [vmem:[%s435_s8] ss:$0 sm:$0xff] }
 0x107   :  { %v101_v51 = vadd.f32 %v97_v48, %v96_v47  ;;  %v98_v52 = vadd.f32 %v95_v50, %v94_v49 }
 0x109   :  { %102 = vadd.xlane.f32.xlu1 %v101_v51  ;;  %99 = vadd.xlane.f32.xlu0 %v98_v52 }
 0x17c   :  { %v103_v56 = vpop.xlane.xlu1 %102  ;;  %v100_v57 = vpop.xlane.xlu0 %99 }
 0x17d   :  { %v105_v58 = vmul.f32 0.00390625, %v103_v56  ;;  %v104_v59 = vmul.f32 0.00390625, %v100_v57 }
 0x17f   :  { %v123_v60 = vperm.slane %v105_v58, %v393_v55  ;;  %v122_v61 = vperm.slane %v104_v59, %v393_v55 }
 0x181   :  { %v125_v62 = vsel %vm124_vm3, %v123_v60, %v122_v61 }
 0x182   :  { %269 = vmatmul.msk.f32.vlgmr.msra.gmra.mxu0 %vm126_vm4, %v125_v62 }
 0x1ff   :  { %v146_v3 = vpop.f32.mrf.mxu0 }
 0x200   :  { %v147_v4 = vadd.f32 %v278_v1, %v146_v3 }
 0x202   :  { %v150_v6 = vsel %vm149_vm5, %v147_v4, 0.0 }
 0x203   :  { %v151_v7 = vrot.slane %v150_v6, 4 }
 0x205   :  { %v152_v9 = vadd.f32 %v151_v7, %v150_v6 }
 0x207   :  { %v153_v10 = vrot.slane %v152_v9, 2 }
 0x209   :  { %v154_v12 = vadd.f32 %v153_v10, %v152_v9 }
 0x20b   :  { %v155_v13 = vrot.slane %v154_v12, 1 }
 0x20d   :  { %v156_v15 = vadd.f32 %v155_v13, %v154_v12 }
 0x20f   :  { %v164_v16 = vmul.f32 %v163_v14, %v156_v15 }
 0x211   :  { %v165_v17 = vsub.f32 %v147_v4, %v164_v16 }
 0x213   :  { %v166_v18 = vmul.f32 %v165_v17, %v165_v17 }
 0x215   :  { %v167_v19 = vsel %vm149_vm5, %v166_v18, 0.0 }
 0x216   :  { %v168_v20 = vrot.slane %v167_v19, 4 }
 0x218   :  { %v169_v21 = vadd.f32 %v168_v20, %v167_v19 }
 0x21a   :  { %v170_v24 = vrot.slane %v169_v21, 2 }
 0x21c   :  { %v171_v26 = vadd.f32 %v170_v24, %v169_v21 }
 0x21e   :  { %v172_v27 = vrot.slane %v171_v26, 1 }
 0x220   :  { %v173_v29 = vadd.f32 %v172_v27, %v171_v26 }
 0x222   :  { %v174_v30 = vmul.f32 %v173_v29, %v163_v14 }
 0x224   :  { %v175_v31 = vadd.f32 1e-05, %v174_v30 }
 0x226   :  { %286 = vrsqrt.f32 %v175_v31  ;;  %vm182_vm8 = vweird.f32 %v175_v31 }
 0x22c   :  { %v287_v32 = vpop.eup %286 }
 0x22d   :  { %v177_v33 = vmul.f32 %v287_v32, %v175_v31  ;;  %vm183_vm7 = vweird.f32 %v287_v32 }
 0x22e   :  { %vm184_vm9 = vmor %vm182_vm8, %vm183_vm7 }
 0x22f   :  { %v178_v34 = vmul.f32 %v287_v32, %v177_v33 }
 0x231   :  { %v179_v35 = vmul.f32 0.5, %v178_v34 }
 0x233   :  { %v180_v36 = vsub.f32 1.5, %v179_v35 }
 0x235   :  { %v181_v37 = vmul.f32 %v287_v32, %v180_v36 }
 0x237   :  { %v185_v39 = vsel %vm184_vm9, %v287_v32, %v181_v37 }
 0x238   :  { %v186_v40 = vmul.f32 %v185_v39, %v165_v17 }
 0x23a   :  { %v190_v42 = vmul.f32 %v279_v38, %v186_v40 }
 0x23c   :  { %v194_v43 = vadd.f32 %v280_v41, %v190_v42 }
 0x23e   :  { %245 = vrot.lane.b32.xlu2 %v194_v43, %s320_s10  ;;  %v195_v44 = vmax.f32 %v194_v43, 0.0 }
 0x240   :  { %270 = vmatmul.msk.f32.vlgmr.msra.gmra.mxu1 %vm199_vm10, %v195_v44 }
 0x298   :  { %v246_v62 = vpop.permute.xlu2 %245 }
 0x2bd   :  { %v220_v46 = vpop.f32.mrf.mxu1 }
 0x2be   :  { %v221_v47 = vadd.f32 %v281_v45, %v220_v46 }
 0x2c0   :  { %v271_v48 = vmul.f32 -1.442695, %v221_v47 }
 0x2c2   :  { %288 = vpow2.f32 %v271_v48 }
 0x2c8   :  { %v289_v49 = vpop.eup %288 }
 0x2c9   :  { %v227_v50 = vadd.f32 1.0, %v289_v49 }
 0x2cb   :  { %290 = vrcp.f32 %v227_v50  ;;  %v239_v54 = vand.u32 2147483648, %v227_v50  ;;  %v237_v57 = vand.u32 2147483647, %v227_v50  ;;  %vm233_vm12 = vweird.f32 %v227_v50 }
 0x2cd   :  { %v240_v59 = vor.u32 1.1754944e-38, %v239_v54  ;;  %vm238_vm15 = vcmp.eq.f32.partialorder %v237_v57, 8.507059e+37 }
 0x2d1   :  { %v291_v51 = vpop.eup %290 }
 0x2d2   :  { %v229_v52 = vmul.f32 %v291_v51, %v227_v50  ;;  %vm234_vm11 = vweird.f32 %v291_v51 }
 0x2d3   :  { %vm235_vm14 = vmor %vm233_vm12, %vm234_vm11 }
 0x2d4   :  { %v230_v53 = vsub.f32 1.0, %v229_v52 }
 0x2d6   :  { %v231_v56 = vmul.f32 %v291_v51, %v230_v53 }
 0x2d8   :  { %v232_v58 = vadd.f32 %v291_v51, %v231_v56 }
 0x2da   :  { %v236_v60 = vsel %vm235_vm14, %v291_v51, %v232_v58 }
 0x2db   :  { %v241_v61 = vsel %vm238_vm15, %v240_v59, %v236_v60 }
 0x2dc   :  { %v243_v63 = vsel %vm223_vm13, %v241_v61, %v221_v47 }
 0x2dd   :  { %v249_v0 = vsel %vm248_vm0, %v243_v63, %v246_v62 }
 0x2de   :  { %v251_v1 = vsel %vm250_vm1, %v249_v0, 0.0 }
 0x2df   :  { %252 = vst [vmem:[#allocation2] sm:$0x3] %v251_v1 }
 0x2e0   :  { %263 = dma.vmem_to_hbm [thread:$0]  %s259_s6, 32, %s261_s14, [#allocation3]  }
 0x2e1   :  { %316 = dma.done.wait [#allocation3], 32  }
 0x2e2   :  { %317 = vsyncadd [#allocation3], 4294967264 }
 0x2e3   :  { %268 = vsyncpa [#allocation3], 1 }

</bundles_post_ra>
